<compile_context>
chip_gen: v7x
topology: tpu7x:2x2x1
jax: 0.10.0
libtpu: 0.0.40
codegen_flags: <defaults>
</compile_context>

<pallas_src>
import functools

import jax
import jax.numpy as jnp
from jax.experimental import pallas as pl
from jax.experimental.pallas import tpu as pltpu


def _lstm_chunk_kernel(xp_ref, whh_ref, wd_ref, bd_ref, out_ref,
                       h_sc, c_sc, hbuf_sc, *, hidden_size, t_chunk):
    """One grid step = one chunk of T_CHUNK LSTM timesteps + batched dense head.

    xp_ref : (T_CHUNK, B, 4H)  pre-projected inputs (x @ W_ih^T + b_ih + b_hh)
    whh_ref: (H, 4H)           pre-transposed recurrent weight
    wd_ref : (1, 1, H)         dense weight row
    bd_ref : (1, 1)            dense bias
    out_ref: (B, T_CHUNK)      sigmoid(dense(h_t)) with time on the lane axis
    """
    H = hidden_size

    @pl.when(pl.program_id(0) == 0)
    def _():
        # _init_hidden: h0 = c0 = zeros (carried across chunks in VMEM scratch).
        h_sc[...] = jnp.zeros_like(h_sc)
        c_sc[...] = jnp.zeros_like(c_sc)

    whh = whh_ref[...]  # (H, 4H); loop-invariant, loaded once per chunk.

    def step(t, carry):
        h, c = carry
        # Single MXU matmul per step; input projection + both biases already
        # folded into xp_ref.
        gates = xp_ref[t] + jnp.dot(h, whh, preferred_element_type=jnp.float32)
        i_g = jax.nn.sigmoid(gates[:, 0 * H:1 * H])
        f_g = jax.nn.sigmoid(gates[:, 1 * H:2 * H])
        g_g = jnp.tanh(gates[:, 2 * H:3 * H])
        o_g = jax.nn.sigmoid(gates[:, 3 * H:4 * H])
        c_new = f_g * c + i_g * g_g
        h_new = o_g * jnp.tanh(c_new)
        hbuf_sc[t] = h_new  # stash for the batched dense head below
        return (h_new, c_new)

    unroll = True if t_chunk <= 16 else 8
    h_fin, c_fin = jax.lax.fori_loop(
        0, t_chunk, step, (h_sc[...], c_sc[...]), unroll=unroll)
    h_sc[...] = h_fin
    c_sc[...] = c_fin

    # Batched dense + sigmoid head for the whole chunk:
    # VPU multiply + XLU lane reduction (no per-step N=1 MXU matmul).
    energy = jax.nn.sigmoid(
        jnp.sum(hbuf_sc[...] * wd_ref[...], axis=-1) + bd_ref[...])  # (T_CHUNK, B)
    out_ref[...] = energy.T.astype(out_ref.dtype)                    # (B, T_CHUNK)


def lstm_dense_pallas(xp, whh_t, wd3, bd2, *, hidden_size, t_chunk):
    """xp: (T_pad, B_pad, 4H) f32. Returns (B_pad, T_pad) f32."""
    T_pad, B_pad, H4 = xp.shape
    H = hidden_size
    num_chunks = T_pad // t_chunk

    kernel = functools.partial(_lstm_chunk_kernel,
                               hidden_size=H, t_chunk=t_chunk)

    return pl.pallas_call(
        kernel,
        out_shape=jax.ShapeDtypeStruct((B_pad, T_pad), jnp.float32),
        grid_spec=pltpu.PrefetchScalarGridSpec(
            num_scalar_prefetch=0,
            grid=(num_chunks,),
            in_specs=[
                pl.BlockSpec((t_chunk, B_pad, H4), lambda c: (c, 0, 0)),  # x_proj chunk
                pl.BlockSpec((H, H4), lambda c: (0, 0)),                  # W_hh^T
                pl.BlockSpec((1, 1, H), lambda c: (0, 0, 0)),             # dense w
                pl.BlockSpec((1, 1), lambda c: (0, 0)),                   # dense b
            ],
            out_specs=pl.BlockSpec((B_pad, t_chunk), lambda c: (0, c)),
            scratch_shapes=[
                pltpu.VMEM((B_pad, H), jnp.float32),           # h carry
                pltpu.VMEM((B_pad, H), jnp.float32),           # c carry
                pltpu.VMEM((t_chunk, B_pad, H), jnp.float32),  # per-chunk h buffer
            ],
        ),
        compiler_params=pltpu.CompilerParams(
            dimension_semantics=("arbitrary",),  # sequential recurrence over chunks
        ),
    )(xp, whh_t, wd3, bd2)


def rnn_network_forward(sequences, params):
    """Full forward pass matching RNNNetwork.forward.

    sequences: (B, T) int32 token ids. Returns (B, T, 1) float32.
    """
    B, T = sequences.shape
    w_ih = params["w_ih"].astype(jnp.float32)   # (4H, E)
    w_hh = params["w_hh"].astype(jnp.float32)   # (4H, H)
    H = w_hh.shape[1]

    # Hoist the input projection out of the recurrence: project the embedding
    # table once and fold both LSTM biases in.
    bias = (params["b_ih"] + params["b_hh"]).astype(jnp.float32)       # (4H,)
    emb_proj = params["emb"].astype(jnp.float32) @ w_ih.T + bias       # (V, 4H)

    # Pad batch to a sublane multiple of 8 (independent rows, sliced off later).
    B_pad = ((B + 7) // 8) * 8
    seq_pad = jnp.pad(sequences, ((0, B_pad - B), (0, 0)))

    # Time-major gather of the projected embeddings: (T, B_pad, 4H).
    xp = jnp.take(emb_proj, seq_pad.T, axis=0)

    # Chunk the time dimension: small T -> one chunk; long T -> lane-aligned
    # chunks of 128 so the (B_pad, T_CHUNK) output block stays lane-dense.
    if T <= 128:
        t_chunk, T_pad = T, T
    else:
        t_chunk = 128
        T_pad = ((T + 127) // 128) * 128
        xp = jnp.pad(xp, ((0, T_pad - T), (0, 0), (0, 0)))

    whh_t = w_hh.T                                                     # (H, 4H)
    wd3 = params["w_dense"].reshape(1, 1, H).astype(jnp.float32)
    bd2 = params["b_dense"].reshape(1, 1).astype(jnp.float32)

    out_bt = lstm_dense_pallas(xp, whh_t, wd3, bd2,
                               hidden_size=H, t_chunk=t_chunk)         # (B_pad, T_pad)

    prediction = out_bt[:B, :T, None]                                  # (B, T, 1)
    return prediction


def rnn_network_reference(sequences, params):
    """Pure-JAX reference (scan LSTM) used only for a correctness sanity check."""
    emb = jnp.take(params["emb"], sequences, axis=0)                   # (B, T, E)
    x = jnp.transpose(emb, (1, 0, 2)).astype(jnp.float32)              # (T, B, E)
    B = sequences.shape[0]
    H = params["w_hh"].shape[1]

    def step(carry, x_t):
        h, c = carry
        gates = (x_t @ params["w_ih"].T + h @ params["w_hh"].T
                 + params["b_ih"] + params["b_hh"])
        i_g = jax.nn.sigmoid(gates[:, 0 * H:1 * H])
        f_g = jax.nn.sigmoid(gates[:, 1 * H:2 * H])
        g_g = jnp.tanh(gates[:, 2 * H:3 * H])
        o_g = jax.nn.sigmoid(gates[:, 3 * H:4 * H])
        c = f_g * c + i_g * g_g
        h = o_g * jnp.tanh(c)
        return (h, c), h

    init = (jnp.zeros((B, H), jnp.float32), jnp.zeros((B, H), jnp.float32))
    _, hs = jax.lax.scan(step, init, x)                                # (T, B, H)
    energy = jax.nn.sigmoid(hs @ params["w_dense"].T + params["b_dense"])
    return jnp.transpose(energy, (1, 0, 2))                            # (B, T, 1)


def init_params(key, vocab_size, pad_idx, emb_size, hidden_size):
    ks = jax.random.split(key, 7)
    scale = 1.0 / jnp.sqrt(hidden_size)

    emb = jax.random.normal(ks[0], (vocab_size, emb_size), jnp.float32)
    emb = emb.at[pad_idx].set(0.0)  # padding_idx row is zero

    def unif(k, shape):
        return jax.random.uniform(k, shape, jnp.float32, -scale, scale)

    return {
        "emb": emb,
        "w_ih": unif(ks[1], (4 * hidden_size, emb_size)),
        "w_hh": unif(ks[2], (4 * hidden_size, hidden_size)),
        "b_ih": unif(ks[3], (4 * hidden_size,)),
        "b_hh": unif(ks[4], (4 * hidden_size,)),
        "w_dense": unif(ks[5], (1, hidden_size)),
        "b_dense": unif(ks[6], (1,)),
    }


if __name__ == "__main__":
    VOCAB_SIZE = 32   # stands in for character_vocab.size
    PAD_IDX = 0       # stands in for character_vocab.PAD_IDX
    EMB_SIZE = 16     # module default
    HIDDEN_SIZE = 64  # module default
    BATCH = 2
    SEQ_LEN = 8

    key = jax.random.PRNGKey(0)
    pkey, skey = jax.random.split(key)

    params = init_params(pkey, VOCAB_SIZE, PAD_IDX, EMB_SIZE, HIDDEN_SIZE)
    sequences = jax.random.randint(skey, (BATCH, SEQ_LEN), 0, VOCAB_SIZE, jnp.int32)

    prediction = jax.jit(rnn_network_forward)(sequences, params)
    prediction = jax.block_until_ready(prediction)

    assert prediction.shape == (BATCH, SEQ_LEN, 1), prediction.shape
    assert bool(jnp.all(jnp.isfinite(prediction)))

    # Correctness sanity check against a pure-JAX reference.
    ref = rnn_network_reference(sequences, params)
    max_err = float(jnp.max(jnp.abs(prediction - ref)))
    assert max_err < 5e-3, f"mismatch vs reference: {max_err}"

    print("KERNEL_OK")
</pallas_src>

<mosaic_0001>
module attributes {stable_mosaic.version = 11 : i64} {
  func.func @_lstm_chunk_kernel(%arg0: i32, %arg1: memref<8x8x256xf32, #tpu.memory_space<vmem>>, %arg2: memref<64x256xf32, #tpu.memory_space<vmem>>, %arg3: memref<1x1x64xf32, #tpu.memory_space<vmem>>, %arg4: memref<1x1xf32, #tpu.memory_space<vmem>>, %arg5: memref<8x8xf32, #tpu.memory_space<vmem>>, %arg6: memref<8x64xf32, #tpu.memory_space<vmem>>, %arg7: memref<8x64xf32, #tpu.memory_space<vmem>>, %arg8: memref<8x8x64xf32, #tpu.memory_space<vmem>>) attributes {dimension_semantics = [#tpu.dimension_semantics<arbitrary>], iteration_bounds = array<i64: 1>, scalar_prefetch = 0 : i64, scratch_operands = 3 : i64, tpu.core_type = #tpu.core_type<tc>, window_params = [{transform_indices = @transform_0, window_bounds = array<i64: 8, 8, 256>}, {pipeline_mode = #tpu.pipeline_mode<synchronous>, transform_indices = @transform_1, window_bounds = array<i64: 64, 256>}, {pipeline_mode = #tpu.pipeline_mode<synchronous>, transform_indices = @transform_2, window_bounds = array<i64: 1, 1, 64>}, {pipeline_mode = #tpu.pipeline_mode<synchronous>, transform_indices = @transform_3, window_bounds = array<i64: 1, 1>}, {transform_indices = @transform_4, window_bounds = array<i64: 8, 8>}]} {
    %c0_i32 = arith.constant 0 : i32
    %0 = arith.cmpi eq, %arg0, %c0_i32 : i32
    %1 = arith.extui %0 : i1 to i32
    %c0_i32_0 = arith.constant 0 : i32
    %2 = arith.cmpi ne, %1, %c0_i32_0 : i32
    scf.if %2 {
      %cst_86 = arith.constant 0.000000e+00 : f32
      %295 = vector.broadcast %cst_86 : f32 to vector<8x64xf32>
      %c0_87 = arith.constant 0 : index
      %c0_88 = arith.constant 0 : index
      %296 = vector.load %arg6[%c0_87, %c0_88] : memref<8x64xf32, #tpu.memory_space<vmem>>, vector<8x64xf32>
      tpu.vector_store %arg6[%c0_87, %c0_88], %295 {strides = array<i32>} : memref<8x64xf32, #tpu.memory_space<vmem>>, vector<8x64xf32>,
      %cst_89 = arith.constant 0.000000e+00 : f32
      %297 = vector.broadcast %cst_89 : f32 to vector<8x64xf32>
      %c0_90 = arith.constant 0 : index
      %c0_91 = arith.constant 0 : index
      %298 = vector.load %arg7[%c0_90, %c0_91] : memref<8x64xf32, #tpu.memory_space<vmem>>, vector<8x64xf32>
      tpu.vector_store %arg7[%c0_90, %c0_91], %297 {strides = array<i32>} : memref<8x64xf32, #tpu.memory_space<vmem>>, vector<8x64xf32>,
    } else {
    }
    %c0 = arith.constant 0 : index
    %c0_1 = arith.constant 0 : index
    %3 = vector.load %arg2[%c0, %c0_1] : memref<64x256xf32, #tpu.memory_space<vmem>>, vector<64x256xf32>
    %c0_2 = arith.constant 0 : index
    %c0_3 = arith.constant 0 : index
    %4 = vector.load %arg6[%c0_2, %c0_3] : memref<8x64xf32, #tpu.memory_space<vmem>>, vector<8x64xf32>
    %c0_4 = arith.constant 0 : index
    %c0_5 = arith.constant 0 : index
    %5 = vector.load %arg7[%c0_4, %c0_5] : memref<8x64xf32, #tpu.memory_space<vmem>>, vector<8x64xf32>
    %c0_i32_6 = arith.constant 0 : i32
    %6 = arith.index_cast %c0_i32_6 : i32 to index
    %c0_7 = arith.constant 0 : index
    %c0_8 = arith.constant 0 : index
    %7 = vector.load %arg1[%6, %c0_7, %c0_8] : memref<8x8x256xf32, #tpu.memory_space<vmem>>, vector<1x8x256xf32>
    %8 = vector.shape_cast %7 : vector<1x8x256xf32> to vector<8x256xf32>
    %cst = arith.constant dense<0.000000e+00> : vector<8x256xf32>
    %9 = tpu.matmul %4, %3, %cst {dimension_numbers = #tpu.dot_dimension_numbers<[1], [0], [0], [1], [0, 0, 1, 1], [], []>} : vector<8x64xf32>, vector<64x256xf32>, vector<8x256xf32> -> vector<8x256xf32>
    %10 = arith.addf %8, %9 : vector<8x256xf32>
    %11 = vector.extract_strided_slice %10 {offsets = [0, 0], sizes = [8, 64], strides = [1, 1]} : vector<8x256xf32> to vector<8x64xf32>
    %12 = arith.negf %11 : vector<8x64xf32>
    %13 = math.exp %12 : vector<8x64xf32>
    %cst_9 = arith.constant 1.000000e+00 : f32
    %14 = vector.broadcast %cst_9 : f32 to vector<8x64xf32>
    %15 = arith.addf %14, %13 : vector<8x64xf32>
    %16 = arith.divf %14, %15 : vector<8x64xf32>
    %17 = vector.extract_strided_slice %10 {offsets = [0, 64], sizes = [8, 64], strides = [1, 1]} : vector<8x256xf32> to vector<8x64xf32>
    %18 = arith.negf %17 : vector<8x64xf32>
    %19 = math.exp %18 : vector<8x64xf32>
    %cst_10 = arith.constant 1.000000e+00 : f32
    %20 = vector.broadcast %cst_10 : f32 to vector<8x64xf32>
    %21 = arith.addf %20, %19 : vector<8x64xf32>
    %22 = arith.divf %20, %21 : vector<8x64xf32>
    %23 = vector.extract_strided_slice %10 {offsets = [0, 128], sizes = [8, 64], strides = [1, 1]} : vector<8x256xf32> to vector<8x64xf32>
    %24 = math.tanh %23 : vector<8x64xf32>
    %25 = vector.extract_strided_slice %10 {offsets = [0, 192], sizes = [8, 64], strides = [1, 1]} : vector<8x256xf32> to vector<8x64xf32>
    %26 = arith.negf %25 : vector<8x64xf32>
    %27 = math.exp %26 : vector<8x64xf32>
    %cst_11 = arith.constant 1.000000e+00 : f32
    %28 = vector.broadcast %cst_11 : f32 to vector<8x64xf32>
    %29 = arith.addf %28, %27 : vector<8x64xf32>
    %30 = arith.divf %28, %29 : vector<8x64xf32>
    %31 = arith.mulf %22, %5 : vector<8x64xf32>
    %32 = arith.mulf %16, %24 : vector<8x64xf32>
    %33 = arith.addf %31, %32 : vector<8x64xf32>
    %34 = math.tanh %33 : vector<8x64xf32>
    %35 = arith.mulf %30, %34 : vector<8x64xf32>
    %36 = arith.index_cast %c0_i32_6 : i32 to index
    %c0_12 = arith.constant 0 : index
    %c0_13 = arith.constant 0 : index
    %37 = vector.load %arg8[%36, %c0_12, %c0_13] : memref<8x8x64xf32, #tpu.memory_space<vmem>>, vector<1x8x64xf32>
    %38 = vector.shape_cast %37 : vector<1x8x64xf32> to vector<8x64xf32>
    %39 = vector.shape_cast %35 : vector<8x64xf32> to vector<1x8x64xf32>
    tpu.vector_store %arg8[%36, %c0_12, %c0_13], %39 {strides = array<i32>} : memref<8x8x64xf32, #tpu.memory_space<vmem>>, vector<1x8x64xf32>,
    %c1_i32 = arith.constant 1 : i32
    %40 = arith.index_cast %c1_i32 : i32 to index
    %c0_14 = arith.constant 0 : index
    %c0_15 = arith.constant 0 : index
    %41 = vector.load %arg1[%40, %c0_14, %c0_15] : memref<8x8x256xf32, #tpu.memory_space<vmem>>, vector<1x8x256xf32>
    %42 = vector.shape_cast %41 : vector<1x8x256xf32> to vector<8x256xf32>
    %cst_16 = arith.constant dense<0.000000e+00> : vector<8x256xf32>
    %43 = tpu.matmul %35, %3, %cst_16 {dimension_numbers = #tpu.dot_dimension_numbers<[1], [0], [0], [1], [0, 0, 1, 1], [], []>} : vector<8x64xf32>, vector<64x256xf32>, vector<8x256xf32> -> vector<8x256xf32>
    %44 = arith.addf %42, %43 : vector<8x256xf32>
    %45 = vector.extract_strided_slice %44 {offsets = [0, 0], sizes = [8, 64], strides = [1, 1]} : vector<8x256xf32> to vector<8x64xf32>
    %46 = arith.negf %45 : vector<8x64xf32>
    %47 = math.exp %46 : vector<8x64xf32>
    %cst_17 = arith.constant 1.000000e+00 : f32
    %48 = vector.broadcast %cst_17 : f32 to vector<8x64xf32>
    %49 = arith.addf %48, %47 : vector<8x64xf32>
    %50 = arith.divf %48, %49 : vector<8x64xf32>
    %51 = vector.extract_strided_slice %44 {offsets = [0, 64], sizes = [8, 64], strides = [1, 1]} : vector<8x256xf32> to vector<8x64xf32>
    %52 = arith.negf %51 : vector<8x64xf32>
    %53 = math.exp %52 : vector<8x64xf32>
    %cst_18 = arith.constant 1.000000e+00 : f32
    %54 = vector.broadcast %cst_18 : f32 to vector<8x64xf32>
    %55 = arith.addf %54, %53 : vector<8x64xf32>
    %56 = arith.divf %54, %55 : vector<8x64xf32>
    %57 = vector.extract_strided_slice %44 {offsets = [0, 128], sizes = [8, 64], strides = [1, 1]} : vector<8x256xf32> to vector<8x64xf32>
    %58 = math.tanh %57 : vector<8x64xf32>
    %59 = vector.extract_strided_slice %44 {offsets = [0, 192], sizes = [8, 64], strides = [1, 1]} : vector<8x256xf32> to vector<8x64xf32>
    %60 = arith.negf %59 : vector<8x64xf32>
    %61 = math.exp %60 : vector<8x64xf32>
    %cst_19 = arith.constant 1.000000e+00 : f32
    %62 = vector.broadcast %cst_19 : f32 to vector<8x64xf32>
    %63 = arith.addf %62, %61 : vector<8x64xf32>
    %64 = arith.divf %62, %63 : vector<8x64xf32>
    %65 = arith.mulf %56, %33 : vector<8x64xf32>
    %66 = arith.mulf %50, %58 : vector<8x64xf32>
    %67 = arith.addf %65, %66 : vector<8x64xf32>
    %68 = math.tanh %67 : vector<8x64xf32>
    %69 = arith.mulf %64, %68 : vector<8x64xf32>
    %70 = arith.index_cast %c1_i32 : i32 to index
    %c0_20 = arith.constant 0 : index
    %c0_21 = arith.constant 0 : index
    %71 = vector.load %arg8[%70, %c0_20, %c0_21] : memref<8x8x64xf32, #tpu.memory_space<vmem>>, vector<1x8x64xf32>
    %72 = vector.shape_cast %71 : vector<1x8x64xf32> to vector<8x64xf32>
    %73 = vector.shape_cast %69 : vector<8x64xf32> to vector<1x8x64xf32>
    tpu.vector_store %arg8[%70, %c0_20, %c0_21], %73 {strides = array<i32>} : memref<8x8x64xf32, #tpu.memory_space<vmem>>, vector<1x8x64xf32>,
    %c2_i32 = arith.constant 2 : i32
    %74 = arith.index_cast %c2_i32 : i32 to index
    %c0_22 = arith.constant 0 : index
    %c0_23 = arith.constant 0 : index
    %75 = vector.load %arg1[%74, %c0_22, %c0_23] : memref<8x8x256xf32, #tpu.memory_space<vmem>>, vector<1x8x256xf32>
    %76 = vector.shape_cast %75 : vector<1x8x256xf32> to vector<8x256xf32>
    %cst_24 = arith.constant dense<0.000000e+00> : vector<8x256xf32>
    %77 = tpu.matmul %69, %3, %cst_24 {dimension_numbers = #tpu.dot_dimension_numbers<[1], [0], [0], [1], [0, 0, 1, 1], [], []>} : vector<8x64xf32>, vector<64x256xf32>, vector<8x256xf32> -> vector<8x256xf32>
    %78 = arith.addf %76, %77 : vector<8x256xf32>
    %79 = vector.extract_strided_slice %78 {offsets = [0, 0], sizes = [8, 64], strides = [1, 1]} : vector<8x256xf32> to vector<8x64xf32>
    %80 = arith.negf %79 : vector<8x64xf32>
    %81 = math.exp %80 : vector<8x64xf32>
    %cst_25 = arith.constant 1.000000e+00 : f32
    %82 = vector.broadcast %cst_25 : f32 to vector<8x64xf32>
    %83 = arith.addf %82, %81 : vector<8x64xf32>
    %84 = arith.divf %82, %83 : vector<8x64xf32>
    %85 = vector.extract_strided_slice %78 {offsets = [0, 64], sizes = [8, 64], strides = [1, 1]} : vector<8x256xf32> to vector<8x64xf32>
    %86 = arith.negf %85 : vector<8x64xf32>
    %87 = math.exp %86 : vector<8x64xf32>
    %cst_26 = arith.constant 1.000000e+00 : f32
    %88 = vector.broadcast %cst_26 : f32 to vector<8x64xf32>
    %89 = arith.addf %88, %87 : vector<8x64xf32>
    %90 = arith.divf %88, %89 : vector<8x64xf32>
    %91 = vector.extract_strided_slice %78 {offsets = [0, 128], sizes = [8, 64], strides = [1, 1]} : vector<8x256xf32> to vector<8x64xf32>
    %92 = math.tanh %91 : vector<8x64xf32>
    %93 = vector.extract_strided_slice %78 {offsets = [0, 192], sizes = [8, 64], strides = [1, 1]} : vector<8x256xf32> to vector<8x64xf32>
    %94 = arith.negf %93 : vector<8x64xf32>
    %95 = math.exp %94 : vector<8x64xf32>
    %cst_27 = arith.constant 1.000000e+00 : f32
    %96 = vector.broadcast %cst_27 : f32 to vector<8x64xf32>
    %97 = arith.addf %96, %95 : vector<8x64xf32>
    %98 = arith.divf %96, %97 : vector<8x64xf32>
    %99 = arith.mulf %90, %67 : vector<8x64xf32>
    %100 = arith.mulf %84, %92 : vector<8x64xf32>
    %101 = arith.addf %99, %100 : vector<8x64xf32>
    %102 = math.tanh %101 : vector<8x64xf32>
    %103 = arith.mulf %98, %102 : vector<8x64xf32>
    %104 = arith.index_cast %c2_i32 : i32 to index
    %c0_28 = arith.constant 0 : index
    %c0_29 = arith.constant 0 : index
    %105 = vector.load %arg8[%104, %c0_28, %c0_29] : memref<8x8x64xf32, #tpu.memory_space<vmem>>, vector<1x8x64xf32>
    %106 = vector.shape_cast %105 : vector<1x8x64xf32> to vector<8x64xf32>
    %107 = vector.shape_cast %103 : vector<8x64xf32> to vector<1x8x64xf32>
    tpu.vector_store %arg8[%104, %c0_28, %c0_29], %107 {strides = array<i32>} : memref<8x8x64xf32, #tpu.memory_space<vmem>>, vector<1x8x64xf32>,
    %c3_i32 = arith.constant 3 : i32
    %108 = arith.index_cast %c3_i32 : i32 to index
    %c0_30 = arith.constant 0 : index
    %c0_31 = arith.constant 0 : index
    %109 = vector.load %arg1[%108, %c0_30, %c0_31] : memref<8x8x256xf32, #tpu.memory_space<vmem>>, vector<1x8x256xf32>
    %110 = vector.shape_cast %109 : vector<1x8x256xf32> to vector<8x256xf32>
    %cst_32 = arith.constant dense<0.000000e+00> : vector<8x256xf32>
    %111 = tpu.matmul %103, %3, %cst_32 {dimension_numbers = #tpu.dot_dimension_numbers<[1], [0], [0], [1], [0, 0, 1, 1], [], []>} : vector<8x64xf32>, vector<64x256xf32>, vector<8x256xf32> -> vector<8x256xf32>
    %112 = arith.addf %110, %111 : vector<8x256xf32>
    %113 = vector.extract_strided_slice %112 {offsets = [0, 0], sizes = [8, 64], strides = [1, 1]} : vector<8x256xf32> to vector<8x64xf32>
    %114 = arith.negf %113 : vector<8x64xf32>
    %115 = math.exp %114 : vector<8x64xf32>
    %cst_33 = arith.constant 1.000000e+00 : f32
    %116 = vector.broadcast %cst_33 : f32 to vector<8x64xf32>
    %117 = arith.addf %116, %115 : vector<8x64xf32>
    %118 = arith.divf %116, %117 : vector<8x64xf32>
    %119 = vector.extract_strided_slice %112 {offsets = [0, 64], sizes = [8, 64], strides = [1, 1]} : vector<8x256xf32> to vector<8x64xf32>
    %120 = arith.negf %119 : vector<8x64xf32>
    %121 = math.exp %120 : vector<8x64xf32>
    %cst_34 = arith.constant 1.000000e+00 : f32
    %122 = vector.broadcast %cst_34 : f32 to vector<8x64xf32>
    %123 = arith.addf %122, %121 : vector<8x64xf32>
    %124 = arith.divf %122, %123 : vector<8x64xf32>
    %125 = vector.extract_strided_slice %112 {offsets = [0, 128], sizes = [8, 64], strides = [1, 1]} : vector<8x256xf32> to vector<8x64xf32>
    %126 = math.tanh %125 : vector<8x64xf32>
    %127 = vector.extract_strided_slice %112 {offsets = [0, 192], sizes = [8, 64], strides = [1, 1]} : vector<8x256xf32> to vector<8x64xf32>
    %128 = arith.negf %127 : vector<8x64xf32>
    %129 = math.exp %128 : vector<8x64xf32>
    %cst_35 = arith.constant 1.000000e+00 : f32
    %130 = vector.broadcast %cst_35 : f32 to vector<8x64xf32>
    %131 = arith.addf %130, %129 : vector<8x64xf32>
    %132 = arith.divf %130, %131 : vector<8x64xf32>
    %133 = arith.mulf %124, %101 : vector<8x64xf32>
    %134 = arith.mulf %118, %126 : vector<8x64xf32>
    %135 = arith.addf %133, %134 : vector<8x64xf32>
    %136 = math.tanh %135 : vector<8x64xf32>
    %137 = arith.mulf %132, %136 : vector<8x64xf32>
    %138 = arith.index_cast %c3_i32 : i32 to index
    %c0_36 = arith.constant 0 : index
    %c0_37 = arith.constant 0 : index
    %139 = vector.load %arg8[%138, %c0_36, %c0_37] : memref<8x8x64xf32, #tpu.memory_space<vmem>>, vector<1x8x64xf32>
    %140 = vector.shape_cast %139 : vector<1x8x64xf32> to vector<8x64xf32>
    %141 = vector.shape_cast %137 : vector<8x64xf32> to vector<1x8x64xf32>
    tpu.vector_store %arg8[%138, %c0_36, %c0_37], %141 {strides = array<i32>} : memref<8x8x64xf32, #tpu.memory_space<vmem>>, vector<1x8x64xf32>,
    %c4_i32 = arith.constant 4 : i32
    %142 = arith.index_cast %c4_i32 : i32 to index
    %c0_38 = arith.constant 0 : index
    %c0_39 = arith.constant 0 : index
    %143 = vector.load %arg1[%142, %c0_38, %c0_39] : memref<8x8x256xf32, #tpu.memory_space<vmem>>, vector<1x8x256xf32>
    %144 = vector.shape_cast %143 : vector<1x8x256xf32> to vector<8x256xf32>
    %cst_40 = arith.constant dense<0.000000e+00> : vector<8x256xf32>
    %145 = tpu.matmul %137, %3, %cst_40 {dimension_numbers = #tpu.dot_dimension_numbers<[1], [0], [0], [1], [0, 0, 1, 1], [], []>} : vector<8x64xf32>, vector<64x256xf32>, vector<8x256xf32> -> vector<8x256xf32>
    %146 = arith.addf %144, %145 : vector<8x256xf32>
    %147 = vector.extract_strided_slice %146 {offsets = [0, 0], sizes = [8, 64], strides = [1, 1]} : vector<8x256xf32> to vector<8x64xf32>
    %148 = arith.negf %147 : vector<8x64xf32>
    %149 = math.exp %148 : vector<8x64xf32>
    %cst_41 = arith.constant 1.000000e+00 : f32
    %150 = vector.broadcast %cst_41 : f32 to vector<8x64xf32>
    %151 = arith.addf %150, %149 : vector<8x64xf32>
    %152 = arith.divf %150, %151 : vector<8x64xf32>
    %153 = vector.extract_strided_slice %146 {offsets = [0, 64], sizes = [8, 64], strides = [1, 1]} : vector<8x256xf32> to vector<8x64xf32>
    %154 = arith.negf %153 : vector<8x64xf32>
    %155 = math.exp %154 : vector<8x64xf32>
    %cst_42 = arith.constant 1.000000e+00 : f32
    %156 = vector.broadcast %cst_42 : f32 to vector<8x64xf32>
    %157 = arith.addf %156, %155 : vector<8x64xf32>
    %158 = arith.divf %156, %157 : vector<8x64xf32>
    %159 = vector.extract_strided_slice %146 {offsets = [0, 128], sizes = [8, 64], strides = [1, 1]} : vector<8x256xf32> to vector<8x64xf32>
    %160 = math.tanh %159 : vector<8x64xf32>
    %161 = vector.extract_strided_slice %146 {offsets = [0, 192], sizes = [8, 64], strides = [1, 1]} : vector<8x256xf32> to vector<8x64xf32>
    %162 = arith.negf %161 : vector<8x64xf32>
    %163 = math.exp %162 : vector<8x64xf32>
    %cst_43 = arith.constant 1.000000e+00 : f32
    %164 = vector.broadcast %cst_43 : f32 to vector<8x64xf32>
    %165 = arith.addf %164, %163 : vector<8x64xf32>
    %166 = arith.divf %164, %165 : vector<8x64xf32>
    %167 = arith.mulf %158, %135 : vector<8x64xf32>
    %168 = arith.mulf %152, %160 : vector<8x64xf32>
    %169 = arith.addf %167, %168 : vector<8x64xf32>
    %170 = math.tanh %169 : vector<8x64xf32>
    %171 = arith.mulf %166, %170 : vector<8x64xf32>
    %172 = arith.index_cast %c4_i32 : i32 to index
    %c0_44 = arith.constant 0 : index
    %c0_45 = arith.constant 0 : index
    %173 = vector.load %arg8[%172, %c0_44, %c0_45] : memref<8x8x64xf32, #tpu.memory_space<vmem>>, vector<1x8x64xf32>
    %174 = vector.shape_cast %173 : vector<1x8x64xf32> to vector<8x64xf32>
    %175 = vector.shape_cast %171 : vector<8x64xf32> to vector<1x8x64xf32>
    tpu.vector_store %arg8[%172, %c0_44, %c0_45], %175 {strides = array<i32>} : memref<8x8x64xf32, #tpu.memory_space<vmem>>, vector<1x8x64xf32>,
    %c5_i32 = arith.constant 5 : i32
    %176 = arith.index_cast %c5_i32 : i32 to index
    %c0_46 = arith.constant 0 : index
    %c0_47 = arith.constant 0 : index
    %177 = vector.load %arg1[%176, %c0_46, %c0_47] : memref<8x8x256xf32, #tpu.memory_space<vmem>>, vector<1x8x256xf32>
    %178 = vector.shape_cast %177 : vector<1x8x256xf32> to vector<8x256xf32>
    %cst_48 = arith.constant dense<0.000000e+00> : vector<8x256xf32>
    %179 = tpu.matmul %171, %3, %cst_48 {dimension_numbers = #tpu.dot_dimension_numbers<[1], [0], [0], [1], [0, 0, 1, 1], [], []>} : vector<8x64xf32>, vector<64x256xf32>, vector<8x256xf32> -> vector<8x256xf32>
    %180 = arith.addf %178, %179 : vector<8x256xf32>
    %181 = vector.extract_strided_slice %180 {offsets = [0, 0], sizes = [8, 64], strides = [1, 1]} : vector<8x256xf32> to vector<8x64xf32>
    %182 = arith.negf %181 : vector<8x64xf32>
    %183 = math.exp %182 : vector<8x64xf32>
    %cst_49 = arith.constant 1.000000e+00 : f32
    %184 = vector.broadcast %cst_49 : f32 to vector<8x64xf32>
    %185 = arith.addf %184, %183 : vector<8x64xf32>
    %186 = arith.divf %184, %185 : vector<8x64xf32>
    %187 = vector.extract_strided_slice %180 {offsets = [0, 64], sizes = [8, 64], strides = [1, 1]} : vector<8x256xf32> to vector<8x64xf32>
    %188 = arith.negf %187 : vector<8x64xf32>
    %189 = math.exp %188 : vector<8x64xf32>
    %cst_50 = arith.constant 1.000000e+00 : f32
    %190 = vector.broadcast %cst_50 : f32 to vector<8x64xf32>
    %191 = arith.addf %190, %189 : vector<8x64xf32>
    %192 = arith.divf %190, %191 : vector<8x64xf32>
    %193 = vector.extract_strided_slice %180 {offsets = [0, 128], sizes = [8, 64], strides = [1, 1]} : vector<8x256xf32> to vector<8x64xf32>
    %194 = math.tanh %193 : vector<8x64xf32>
    %195 = vector.extract_strided_slice %180 {offsets = [0, 192], sizes = [8, 64], strides = [1, 1]} : vector<8x256xf32> to vector<8x64xf32>
    %196 = arith.negf %195 : vector<8x64xf32>
    %197 = math.exp %196 : vector<8x64xf32>
    %cst_51 = arith.constant 1.000000e+00 : f32
    %198 = vector.broadcast %cst_51 : f32 to vector<8x64xf32>
    %199 = arith.addf %198, %197 : vector<8x64xf32>
    %200 = arith.divf %198, %199 : vector<8x64xf32>
    %201 = arith.mulf %192, %169 : vector<8x64xf32>
    %202 = arith.mulf %186, %194 : vector<8x64xf32>
    %203 = arith.addf %201, %202 : vector<8x64xf32>
    %204 = math.tanh %203 : vector<8x64xf32>
    %205 = arith.mulf %200, %204 : vector<8x64xf32>
    %206 = arith.index_cast %c5_i32 : i32 to index
    %c0_52 = arith.constant 0 : index
    %c0_53 = arith.constant 0 : index
    %207 = vector.load %arg8[%206, %c0_52, %c0_53] : memref<8x8x64xf32, #tpu.memory_space<vmem>>, vector<1x8x64xf32>
    %208 = vector.shape_cast %207 : vector<1x8x64xf32> to vector<8x64xf32>
    %209 = vector.shape_cast %205 : vector<8x64xf32> to vector<1x8x64xf32>
    tpu.vector_store %arg8[%206, %c0_52, %c0_53], %209 {strides = array<i32>} : memref<8x8x64xf32, #tpu.memory_space<vmem>>, vector<1x8x64xf32>,
    %c6_i32 = arith.constant 6 : i32
    %210 = arith.index_cast %c6_i32 : i32 to index
    %c0_54 = arith.constant 0 : index
    %c0_55 = arith.constant 0 : index
    %211 = vector.load %arg1[%210, %c0_54, %c0_55] : memref<8x8x256xf32, #tpu.memory_space<vmem>>, vector<1x8x256xf32>
    %212 = vector.shape_cast %211 : vector<1x8x256xf32> to vector<8x256xf32>
    %cst_56 = arith.constant dense<0.000000e+00> : vector<8x256xf32>
    %213 = tpu.matmul %205, %3, %cst_56 {dimension_numbers = #tpu.dot_dimension_numbers<[1], [0], [0], [1], [0, 0, 1, 1], [], []>} : vector<8x64xf32>, vector<64x256xf32>, vector<8x256xf32> -> vector<8x256xf32>
    %214 = arith.addf %212, %213 : vector<8x256xf32>
    %215 = vector.extract_strided_slice %214 {offsets = [0, 0], sizes = [8, 64], strides = [1, 1]} : vector<8x256xf32> to vector<8x64xf32>
    %216 = arith.negf %215 : vector<8x64xf32>
    %217 = math.exp %216 : vector<8x64xf32>
    %cst_57 = arith.constant 1.000000e+00 : f32
    %218 = vector.broadcast %cst_57 : f32 to vector<8x64xf32>
    %219 = arith.addf %218, %217 : vector<8x64xf32>
    %220 = arith.divf %218, %219 : vector<8x64xf32>
    %221 = vector.extract_strided_slice %214 {offsets = [0, 64], sizes = [8, 64], strides = [1, 1]} : vector<8x256xf32> to vector<8x64xf32>
    %222 = arith.negf %221 : vector<8x64xf32>
    %223 = math.exp %222 : vector<8x64xf32>
    %cst_58 = arith.constant 1.000000e+00 : f32
    %224 = vector.broadcast %cst_58 : f32 to vector<8x64xf32>
    %225 = arith.addf %224, %223 : vector<8x64xf32>
    %226 = arith.divf %224, %225 : vector<8x64xf32>
    %227 = vector.extract_strided_slice %214 {offsets = [0, 128], sizes = [8, 64], strides = [1, 1]} : vector<8x256xf32> to vector<8x64xf32>
    %228 = math.tanh %227 : vector<8x64xf32>
    %229 = vector.extract_strided_slice %214 {offsets = [0, 192], sizes = [8, 64], strides = [1, 1]} : vector<8x256xf32> to vector<8x64xf32>
    %230 = arith.negf %229 : vector<8x64xf32>
    %231 = math.exp %230 : vector<8x64xf32>
    %cst_59 = arith.constant 1.000000e+00 : f32
    %232 = vector.broadcast %cst_59 : f32 to vector<8x64xf32>
    %233 = arith.addf %232, %231 : vector<8x64xf32>
    %234 = arith.divf %232, %233 : vector<8x64xf32>
    %235 = arith.mulf %226, %203 : vector<8x64xf32>
    %236 = arith.mulf %220, %228 : vector<8x64xf32>
    %237 = arith.addf %235, %236 : vector<8x64xf32>
    %238 = math.tanh %237 : vector<8x64xf32>
    %239 = arith.mulf %234, %238 : vector<8x64xf32>
    %240 = arith.index_cast %c6_i32 : i32 to index
    %c0_60 = arith.constant 0 : index
    %c0_61 = arith.constant 0 : index
    %241 = vector.load %arg8[%240, %c0_60, %c0_61] : memref<8x8x64xf32, #tpu.memory_space<vmem>>, vector<1x8x64xf32>
    %242 = vector.shape_cast %241 : vector<1x8x64xf32> to vector<8x64xf32>
    %243 = vector.shape_cast %239 : vector<8x64xf32> to vector<1x8x64xf32>
    tpu.vector_store %arg8[%240, %c0_60, %c0_61], %243 {strides = array<i32>} : memref<8x8x64xf32, #tpu.memory_space<vmem>>, vector<1x8x64xf32>,
    %c7_i32 = arith.constant 7 : i32
    %244 = arith.index_cast %c7_i32 : i32 to index
    %c0_62 = arith.constant 0 : index
    %c0_63 = arith.constant 0 : index
    %245 = vector.load %arg1[%244, %c0_62, %c0_63] : memref<8x8x256xf32, #tpu.memory_space<vmem>>, vector<1x8x256xf32>
    %246 = vector.shape_cast %245 : vector<1x8x256xf32> to vector<8x256xf32>
    %cst_64 = arith.constant dense<0.000000e+00> : vector<8x256xf32>
    %247 = tpu.matmul %239, %3, %cst_64 {dimension_numbers = #tpu.dot_dimension_numbers<[1], [0], [0], [1], [0, 0, 1, 1], [], []>} : vector<8x64xf32>, vector<64x256xf32>, vector<8x256xf32> -> vector<8x256xf32>
    %248 = arith.addf %246, %247 : vector<8x256xf32>
    %249 = vector.extract_strided_slice %248 {offsets = [0, 0], sizes = [8, 64], strides = [1, 1]} : vector<8x256xf32> to vector<8x64xf32>
    %250 = arith.negf %249 : vector<8x64xf32>
    %251 = math.exp %250 : vector<8x64xf32>
    %cst_65 = arith.constant 1.000000e+00 : f32
    %252 = vector.broadcast %cst_65 : f32 to vector<8x64xf32>
    %253 = arith.addf %252, %251 : vector<8x64xf32>
    %254 = arith.divf %252, %253 : vector<8x64xf32>
    %255 = vector.extract_strided_slice %248 {offsets = [0, 64], sizes = [8, 64], strides = [1, 1]} : vector<8x256xf32> to vector<8x64xf32>
    %256 = arith.negf %255 : vector<8x64xf32>
    %257 = math.exp %256 : vector<8x64xf32>
    %cst_66 = arith.constant 1.000000e+00 : f32
    %258 = vector.broadcast %cst_66 : f32 to vector<8x64xf32>
    %259 = arith.addf %258, %257 : vector<8x64xf32>
    %260 = arith.divf %258, %259 : vector<8x64xf32>
    %261 = vector.extract_strided_slice %248 {offsets = [0, 128], sizes = [8, 64], strides = [1, 1]} : vector<8x256xf32> to vector<8x64xf32>
    %262 = math.tanh %261 : vector<8x64xf32>
    %263 = vector.extract_strided_slice %248 {offsets = [0, 192], sizes = [8, 64], strides = [1, 1]} : vector<8x256xf32> to vector<8x64xf32>
    %264 = arith.negf %263 : vector<8x64xf32>
    %265 = math.exp %264 : vector<8x64xf32>
    %cst_67 = arith.constant 1.000000e+00 : f32
    %266 = vector.broadcast %cst_67 : f32 to vector<8x64xf32>
    %267 = arith.addf %266, %265 : vector<8x64xf32>
    %268 = arith.divf %266, %267 : vector<8x64xf32>
    %269 = arith.mulf %260, %237 : vector<8x64xf32>
    %270 = arith.mulf %254, %262 : vector<8x64xf32>
    %271 = arith.addf %269, %270 : vector<8x64xf32>
    %272 = math.tanh %271 : vector<8x64xf32>
    %273 = arith.mulf %268, %272 : vector<8x64xf32>
    %274 = arith.index_cast %c7_i32 : i32 to index
    %c0_68 = arith.constant 0 : index
    %c0_69 = arith.constant 0 : index
    %275 = vector.load %arg8[%274, %c0_68, %c0_69] : memref<8x8x64xf32, #tpu.memory_space<vmem>>, vector<1x8x64xf32>
    %276 = vector.shape_cast %275 : vector<1x8x64xf32> to vector<8x64xf32>
    %277 = vector.shape_cast %273 : vector<8x64xf32> to vector<1x8x64xf32>
    tpu.vector_store %arg8[%274, %c0_68, %c0_69], %277 {strides = array<i32>} : memref<8x8x64xf32, #tpu.memory_space<vmem>>, vector<1x8x64xf32>,
    %c8_i32 = arith.constant 8 : i32
    %c0_70 = arith.constant 0 : index
    %c0_71 = arith.constant 0 : index
    %278 = vector.load %arg6[%c0_70, %c0_71] : memref<8x64xf32, #tpu.memory_space<vmem>>, vector<8x64xf32>
    tpu.vector_store %arg6[%c0_70, %c0_71], %273 {strides = array<i32>} : memref<8x64xf32, #tpu.memory_space<vmem>>, vector<8x64xf32>,
    %c0_72 = arith.constant 0 : index
    %c0_73 = arith.constant 0 : index
    %279 = vector.load %arg7[%c0_72, %c0_73] : memref<8x64xf32, #tpu.memory_space<vmem>>, vector<8x64xf32>
    tpu.vector_store %arg7[%c0_72, %c0_73], %271 {strides = array<i32>} : memref<8x64xf32, #tpu.memory_space<vmem>>, vector<8x64xf32>,
    %c0_74 = arith.constant 0 : index
    %c0_75 = arith.constant 0 : index
    %c0_76 = arith.constant 0 : index
    %280 = vector.load %arg8[%c0_74, %c0_75, %c0_76] : memref<8x8x64xf32, #tpu.memory_space<vmem>>, vector<8x8x64xf32>
    %c0_77 = arith.constant 0 : index
    %c0_78 = arith.constant 0 : index
    %c0_79 = arith.constant 0 : index
    %281 = vector.load %arg3[%c0_77, %c0_78, %c0_79] : memref<1x1x64xf32, #tpu.memory_space<vmem>>, vector<1x1x64xf32>
    %282 = vector.broadcast %281 : vector<1x1x64xf32> to vector<8x8x64xf32>
    %283 = arith.mulf %280, %282 : vector<8x8x64xf32>
    %cst_80 = arith.constant dense<0.000000e+00> : vector<8x8xf32>
    %284 = vector.multi_reduction <add>, %283, %cst_80 [2] : vector<8x8x64xf32> to vector<8x8xf32>
    %c0_81 = arith.constant 0 : index
    %c0_82 = arith.constant 0 : index
    %285 = vector.load %arg4[%c0_81, %c0_82] : memref<1x1xf32, #tpu.memory_space<vmem>>, vector<1x1xf32>
    %286 = vector.broadcast %285 : vector<1x1xf32> to vector<8x8xf32>
    %287 = arith.addf %284, %286 : vector<8x8xf32>
    %288 = arith.negf %287 : vector<8x8xf32>
    %289 = math.exp %288 : vector<8x8xf32>
    %cst_83 = arith.constant 1.000000e+00 : f32
    %290 = vector.broadcast %cst_83 : f32 to vector<8x8xf32>
    %291 = arith.addf %290, %289 : vector<8x8xf32>
    %292 = arith.divf %290, %291 : vector<8x8xf32>
    %293 = tpu.transpose %292, [1, 0] : vector<8x8xf32> -> vector<8x8xf32>
    %c0_84 = arith.constant 0 : index
    %c0_85 = arith.constant 0 : index
    %294 = vector.load %arg5[%c0_84, %c0_85] : memref<8x8xf32, #tpu.memory_space<vmem>>, vector<8x8xf32>
    tpu.vector_store %arg5[%c0_84, %c0_85], %293 {strides = array<i32>} : memref<8x8xf32, #tpu.memory_space<vmem>>, vector<8x8xf32>,
    return
  }
  func.func @transform_0(%arg0: i32) -> (i32, i32, i32) {
    %c0_i32 = arith.constant 0 : i32
    %c0_i32_0 = arith.constant 0 : i32
    %c0_i32_1 = arith.constant 0 : i32
    return %arg0, %c0_i32, %c0_i32_0 : i32, i32, i32
  }
  func.func @transform_1(%arg0: i32) -> (i32, i32) {
    %c0_i32 = arith.constant 0 : i32
    %c0_i32_0 = arith.constant 0 : i32
    %c0_i32_1 = arith.constant 0 : i32
    return %c0_i32, %c0_i32_0 : i32, i32
  }
  func.func @transform_2(%arg0: i32) -> (i32, i32, i32) {
    %c0_i32 = arith.constant 0 : i32
    %c0_i32_0 = arith.constant 0 : i32
    %c0_i32_1 = arith.constant 0 : i32
    %c0_i32_2 = arith.constant 0 : i32
    return %c0_i32, %c0_i32_0, %c0_i32_1 : i32, i32, i32
  }
  func.func @transform_3(%arg0: i32) -> (i32, i32) {
    %c0_i32 = arith.constant 0 : i32
    %c0_i32_0 = arith.constant 0 : i32
    %c0_i32_1 = arith.constant 0 : i32
    return %c0_i32, %c0_i32_0 : i32, i32
  }
  func.func @transform_4(%arg0: i32) -> (i32, i32) {
    %c0_i32 = arith.constant 0 : i32
    %c0_i32_0 = arith.constant 0 : i32
    return %c0_i32, %arg0 : i32, i32
  }
}

</mosaic_0001>

<bundles_post_ra>
// kernel: rnn_network_forward.1
= control target key start
LH: loop header
LB: loop body
LE: loop exit
PB: predicated region body
PF: predicated region fallthrough
CT: control target
= control target key end

     0   :  { %vm23_vm0 = vcmask 523264   ;;  %v1418_v3 = vmov 0.0   ;;  %s1419_s17 = smov 64   ;;  %vm1057_vm1 = vcmask 1041409   ;;  %vm1059_vm2 = vcmask 1042434   ;;  %s1687_s1 = inlined_call_operand.vmem [shape: f32[64,256], index: 1, kind: input, shape index: {}]   ;;  %s1688_s0 = inlined_call_operand.vmem [shape: f32[8,8,256], index: 0, kind: input, shape index: {}]   ;;  %s1689_s2 = inlined_call_operand.vmem [shape: f32[1,1,64], index: 2, kind: input, shape index: {}]   ;;  %s1690_s3 = inlined_call_operand.<no memory space> [shape: f32[1,1], index: 3, kind: input, shape index: {}]   ;;  %s1691_s4 = inlined_call_operand.vmem [shape: f32[8,8], index: 4, kind: output, shape index: {}]  }
   0x1   :  { %v27_v0 = vld [vmem:[%s1687_s1 + $0x8] sm:$0xff]  ;;  %v29_v1 = vld [vmem:[%s1687_s1 + $0x18] sm:$0xff]  ;;  %v26_v2 = vld [vmem:[%s1687_s1] sm:$0xff]  ;;  %114 = vmatprep.mubr.f32.mxu0 %v1418_v3  ;;  %24 = vst.msk [vmem:[#allocation2] sm:$0xff] %vm23_vm0, %v1418_v3  ;;  %223 = vmatprep.mubr.f32.mxu1 %v1418_v3  ;;  %vm1061_vm3 = vcmask 1043459   ;;  %vm1063_vm4 = vcmask 1044484  }
   0x2   :  { %25 = vst.msk [vmem:[#allocation3] sm:$0xff] %vm23_vm0, %v1418_v3  ;;  %v1461_v4 = vpack.c.bf16 %v29_v1, %v27_v0  ;;  %v28_v5 = vld [vmem:[%s1687_s1 + $0x10] sm:$0xff]  ;;  %v31_v6 = vld [vmem:[%s1687_s1 + $0x28] sm:$0xff]  ;;  %v33_v7 = vld [vmem:[%s1687_s1 + $0x38] sm:$0xff]  ;;  %vm1065_vm5 = vcmask 1045509   ;;  %vm1067_vm6 = vcmask 1046534  }
   0x3   :  { %v1472_v8 = vpack.c.bf16 %v28_v5, %v26_v2  ;;  %v1474_v9 = vpack.c.bf16 %v33_v7, %v31_v6  ;;  %v30_v10 = vld [vmem:[%s1687_s1 + $0x20] sm:$0xff]  ;;  %v32_v11 = vld [vmem:[%s1687_s1 + $0x30] sm:$0xff]  ;;  %v35_v12 = vld [vmem:[%s1687_s1 + $0x48] sm:$0xff]  ;;  %vm1069_vm7 = vcmask 1047559   ;;  %vm1104_vm8 = vcmask 64512  }
   0x4   :  { %1159 = vmatprep.subr.bf16.mxu0 %v1461_v4  ;;  %v37_v13 = vld [vmem:[%s1687_s1 + $0x58] sm:$0xff]  ;;  %1175 = vmatprep.subr.bf16.mxu1 %v1461_v4  ;;  %v1491_v14 = vpack.c.bf16 %v32_v11, %v30_v10  ;;  %v34_v16 = vld [vmem:[%s1687_s1 + $0x40] sm:$0xff]  ;;  %v36_v17 = vld [vmem:[%s1687_s1 + $0x50] sm:$0xff] }
   0x5   :  { %1161 = vmatpush1.bf16.msra.mxu0 %v1472_v8  ;;  %1177 = vmatpush1.bf16.msra.mxu1 %v1472_v8  ;;  %v1495_v15 = vpack.c.bf16 %v37_v13, %v35_v12  ;;  %v39_v18 = vld [vmem:[%s1687_s1 + $0x68] sm:$0xff]  ;;  %v41_v19 = vld [vmem:[%s1687_s1 + $0x78] sm:$0xff]  ;;  %v1511_v21 = vpack.c.bf16 %v36_v17, %v34_v16  ;;  %v38_v23 = vld [vmem:[%s1687_s1 + $0x60] sm:$0xff] }
   0x6   :  { %1163 = vmatprep.subr.bf16.mxu0 %v1474_v9  ;;  %1179 = vmatprep.subr.bf16.mxu1 %v1474_v9  ;;  %v1515_v22 = vpack.c.bf16 %v41_v19, %v39_v18  ;;  %v40_v24 = vld [vmem:[%s1687_s1 + $0x70] sm:$0xff]  ;;  %v44_v27 = vld [vmem:[%s1688_s0] sm:$0xff]  ;;  %v45_v32 = vld [vmem:[%s1688_s0 + $0x8] sm:$0xff] }
   0x7   :  { %v1526_v25 = vpack.c.bf16 %v40_v24, %v38_v23  ;;  %v1113_v50 = vld [vmem:[%s1688_s0 + $0x10] sm:$0xff]  ;;  %v1114_v55 = vld [vmem:[%s1688_s0 + $0x18] sm:$0xff]  ;;  %v1118_v12 = vld [vmem:[%s1688_s0 + $0x20] sm:$0xff] }
   0x8   :  { %v42_v26 = vld [vmem:[#allocation2] sm:$0xff]  ;;  %v1119_v19 = vld [vmem:[%s1688_s0 + $0x28] sm:$0xff] }
   0x9   :  { %v43_v20 = vld [vmem:[#allocation3] sm:$0xff]  ;;  %1165 = vmatpush1.bf16.msra.mxu0 %v1491_v14  ;;  %1181 = vmatpush1.bf16.msra.mxu1 %v1491_v14 }
   0xa   :  { %137 = vrot.lane.b32.xlu0 %v43_v20, %s1419_s17  ;;  %1167 = vmatprep.subr.bf16.mxu0 %v1495_v15 }
   0xb   :  { %1183 = vmatprep.subr.bf16.mxu1 %v1495_v15 }
   0xd   :  { %1169 = vmatpush1.bf16.msra.mxu0 %v1511_v21  ;;  %1185 = vmatpush1.bf16.msra.mxu1 %v1511_v21 }
   0xe   :  { %1171 = vmatprep.subr.bf16.mxu0 %v1515_v22  ;;  %1187 = vmatprep.subr.bf16.mxu1 %v1515_v22 }
  0x11   :  { %1173 = vmatpush1.bf16.msra.mxu0 %v1526_v25  ;;  %1189 = vmatpush1.bf16.msra.mxu1 %v1526_v25 }
  0x12   :  { %1191 = vmatprep.subr.bf16.mxu0 %v1461_v4  ;;  %1207 = vmatprep.subr.bf16.mxu1 %v1461_v4 }
  0x14   :  { %1110 = vmatmul.mubr.msk.f32.vlgmr.msra.gmra.mrb[0].mxu0 %vm23_vm0, %v42_v26 }
  0x15   :  { %1193 = vmatpush1.bf16.msra.mxu0 %v1472_v8  ;;  %329 = vmatprep.mubr.f32.mxu0 %v1418_v3 }
  0x16   :  { %1195 = vmatprep.subr.bf16.mxu0 %v1474_v9 }
  0x19   :  { %1197 = vmatpush1.bf16.msra.mxu0 %v1491_v14 }
  0x1a   :  { %1199 = vmatprep.subr.bf16.mxu0 %v1495_v15 }
  0x1d   :  { %1201 = vmatpush1.bf16.msra.mxu0 %v1511_v21 }
  0x1e   :  { %1203 = vmatprep.subr.bf16.mxu0 %v1515_v22 }
  0x21   :  { %1205 = vmatpush1.bf16.msra.mxu0 %v1526_v25 }
  0x22   :  { %1223 = vmatprep.subr.bf16.mxu0 %v1461_v4 }
  0x7c   :  { %v138_v41 = vpop.permute.xlu0 %137 }
  0xe7   :  { %v116_v28 = vpop.f32.mrb[0].mxu0 }
  0xe8   :  { %v121_v29 = vadd.f32 %v116_v28, %v44_v27  ;;  %v118_v30 = vpop.f32.mrb[1].mxu0 }
  0xe9   :  { %v122_v33 = vadd.f32 %v118_v30, %v45_v32 }
  0xea   :  { %v1111_v31 = vmul.f32 -1.442695, %v121_v29 }
  0xeb   :  { %v1112_v39 = vmul.f32 -1.442695, %v122_v33 }
  0xec   :  { %1290 = vpow2.f32 %v1111_v31 }
  0xed   :  { %1292 = vtanh.f32 %v122_v33 }
  0xf6   :  { %v1291_v34 = vpop.eup %1290 }
  0xf7   :  { %v126_v35 = vadd.f32 1.0, %v1291_v34  ;;  %v1293_v36 = vpop.eup %1292 }
  0xf9   :  { %1294 = vrcp.f32 %v126_v35 }
  0xfa   :  { %1296 = vpow2.f32 %v1112_v39  ;;  %v1123_v39 = vld [vmem:[%s1688_s0 + $0x30] sm:$0xff] }
 0x103   :  { %v1295_v37 = vpop.eup %1294 }
 0x104   :  { %v141_v38 = vmul.f32 %v1295_v37, %v1293_v36  ;;  %v1297_v40 = vpop.eup %1296  ;;  %v140_v43 = vmul.f32 %v1295_v37, %v138_v41 }
 0x105   :  { %v133_v42 = vadd.f32 1.0, %v1297_v40 }
 0x106   :  { %143 = vrot.lane.b32.xlu0 %v141_v38, %s1419_s17 }
 0x107   :  { %1298 = vrcp.f32 %v133_v42 }
 0x111   :  { %v1299_v46 = vpop.eup %1298 }
 0x178   :  { %v144_v44 = vpop.permute.xlu0 %143 }
 0x179   :  { %v146_v45 = vadd.f32 %v144_v44, %v140_v43  ;;  %v1124_v44 = vld [vmem:[%s1688_s0 + $0x38] sm:$0xff] }
 0x17b   :  { %1300 = vtanh.f32 %v146_v45 }
 0x185   :  { %v1301_v47 = vpop.eup %1300 }
 0x186   :  { %v148_v48 = vmul.f32 %v1301_v47, %v1299_v46 }
 0x188   :  { %150 = vrot.lane.b32.xlu1 %v148_v48, %s1419_s17 }
 0x1fa   :  { %v151_v49 = vpop.permute.xlu1 %150 }
 0x1fb   :  { %153 = vst.msk [vmem:[#allocation4] sm:$0xff] %vm23_vm0, %v151_v49  ;;  %1115 = vmatmul.mubr.msk.f32.vlgmr.msra.gmra.mrb[0].mxu1 %vm23_vm0, %v151_v49 }
 0x1fc   :  { %1209 = vmatpush1.bf16.msra.mxu1 %v1472_v8  ;;  %435 = vmatprep.mubr.f32.mxu1 %v1418_v3 }
 0x1fd   :  { %1211 = vmatprep.subr.bf16.mxu1 %v1474_v9 }
 0x200   :  { %1213 = vmatpush1.bf16.msra.mxu1 %v1491_v14 }
 0x201   :  { %1215 = vmatprep.subr.bf16.mxu1 %v1495_v15 }
 0x204   :  { %1217 = vmatpush1.bf16.msra.mxu1 %v1511_v21 }
 0x205   :  { %1219 = vmatprep.subr.bf16.mxu1 %v1515_v22 }
 0x208   :  { %1221 = vmatpush1.bf16.msra.mxu1 %v1526_v25 }
 0x209   :  { %1239 = vmatprep.subr.bf16.mxu1 %v1461_v4 }
 0x2ce   :  { %v225_v51 = vpop.f32.mrb[0].mxu1 }
 0x2cf   :  { %v230_v52 = vadd.f32 %v1113_v50, %v225_v51  ;;  %v227_v53 = vpop.f32.mrb[1].mxu1 }
 0x2d0   :  { %v231_v56 = vadd.f32 %v1114_v55, %v227_v53 }
 0x2d1   :  { %v1116_v54 = vmul.f32 -1.442695, %v230_v52 }
 0x2d2   :  { %v1117_v62 = vmul.f32 -1.442695, %v231_v56 }
 0x2d3   :  { %1302 = vpow2.f32 %v1116_v54 }
 0x2d4   :  { %1304 = vtanh.f32 %v231_v56 }
 0x2dd   :  { %v1303_v57 = vpop.eup %1302 }
 0x2de   :  { %v235_v58 = vadd.f32 1.0, %v1303_v57  ;;  %v1305_v59 = vpop.eup %1304 }
 0x2e0   :  { %1306 = vrcp.f32 %v235_v58 }
 0x2e1   :  { %1308 = vpow2.f32 %v1117_v62 }
 0x2ea   :  { %v1307_v60 = vpop.eup %1306 }
 0x2eb   :  { %v246_v61 = vmul.f32 %v1307_v60, %v1305_v59  ;;  %v1309_v63 = vpop.eup %1308  ;;  %v245_v1 = vmul.f32 %v1307_v60, %v146_v45  ;;  %v1128_v60 = vld [vmem:[%s1688_s0 + $0x40] sm:$0xff] }
 0x2ec   :  { %v242_v0 = vadd.f32 1.0, %v1309_v63 }
 0x2ed   :  { %248 = vrot.lane.b32.xlu1 %v246_v61, %s1419_s17 }
 0x2ee   :  { %1310 = vrcp.f32 %v242_v0 }
 0x2f8   :  { %v1311_v6 = vpop.eup %1310 }
 0x35f   :  { %v249_v2 = vpop.permute.xlu1 %248 }
 0x360   :  { %v251_v5 = vadd.f32 %v249_v2, %v245_v1  ;;  %v1129_v1 = vld [vmem:[%s1688_s0 + $0x48] sm:$0xff] }
 0x362   :  { %1312 = vtanh.f32 %v251_v5 }
 0x36c   :  { %v1313_v7 = vpop.eup %1312 }
 0x36d   :  { %v253_v10 = vmul.f32 %v1313_v7, %v1311_v6 }
 0x36f   :  { %255 = vrot.lane.b32.xlu0 %v253_v10, %s1419_s17 }
 0x3e1   :  { %v256_v11 = vpop.permute.xlu0 %255 }
 0x3e2   :  { %259 = vst.msk [vmem:[#allocation4 + $0x8] sm:$0xff] %vm23_vm0, %v256_v11  ;;  %1120 = vmatmul.mubr.msk.f32.vlgmr.msra.gmra.mrb[2].mxu0 %vm23_vm0, %v256_v11 }
 0x3e3   :  { %1225 = vmatpush1.bf16.msra.mxu0 %v1472_v8  ;;  %541 = vmatprep.mubr.f32.mxu0 %v1418_v3 }
 0x3e4   :  { %1227 = vmatprep.subr.bf16.mxu0 %v1474_v9 }
 0x3e7   :  { %1229 = vmatpush1.bf16.msra.mxu0 %v1491_v14 }
 0x3e8   :  { %1231 = vmatprep.subr.bf16.mxu0 %v1495_v15 }
 0x3eb   :  { %1233 = vmatpush1.bf16.msra.mxu0 %v1511_v21 }
 0x3ec   :  { %1235 = vmatprep.subr.bf16.mxu0 %v1515_v22 }
 0x3ef   :  { %1237 = vmatpush1.bf16.msra.mxu0 %v1526_v25 }
 0x3f0   :  { %1255 = vmatprep.subr.bf16.mxu0 %v1461_v4 }
 0x4b5   :  { %v331_v13 = vpop.f32.mrb[2].mxu0 }
 0x4b6   :  { %v336_v16 = vadd.f32 %v1118_v12, %v331_v13  ;;  %v333_v17 = vpop.f32.mrb[3].mxu0 }
 0x4b7   :  { %v337_v20 = vadd.f32 %v1119_v19, %v333_v17 }
 0x4b8   :  { %v1121_v18 = vmul.f32 -1.442695, %v336_v16 }
 0x4b9   :  { %v1122_v29 = vmul.f32 -1.442695, %v337_v20 }
 0x4ba   :  { %1314 = vpow2.f32 %v1121_v18 }
 0x4bb   :  { %1316 = vtanh.f32 %v337_v20 }
 0x4c4   :  { %v1315_v23 = vpop.eup %1314 }
 0x4c5   :  { %v341_v24 = vadd.f32 1.0, %v1315_v23  ;;  %v1317_v26 = vpop.eup %1316 }
 0x4c7   :  { %1318 = vrcp.f32 %v341_v24 }
 0x4c8   :  { %1320 = vpow2.f32 %v1122_v29 }
 0x4d1   :  { %v1319_v27 = vpop.eup %1318 }
 0x4d2   :  { %v352_v28 = vmul.f32 %v1319_v27, %v1317_v26  ;;  %v1321_v30 = vpop.eup %1320  ;;  %v351_v32 = vmul.f32 %v1319_v27, %v251_v5  ;;  %v1133_v27 = vld [vmem:[%s1688_s0 + $0x50] sm:$0xff] }
 0x4d3   :  { %v348_v31 = vadd.f32 1.0, %v1321_v30 }
 0x4d4   :  { %354 = vrot.lane.b32.xlu1 %v352_v28, %s1419_s17 }
 0x4d5   :  { %1322 = vrcp.f32 %v348_v31 }
 0x4df   :  { %v1323_v35 = vpop.eup %1322 }
 0x546   :  { %v355_v33 = vpop.permute.xlu1 %354 }
 0x547   :  { %v357_v34 = vadd.f32 %v355_v33, %v351_v32 }
 0x549   :  { %1324 = vtanh.f32 %v357_v34 }
 0x553   :  { %v1325_v36 = vpop.eup %1324 }
 0x554   :  { %v359_v37 = vmul.f32 %v1325_v36, %v1323_v35 }
 0x556   :  { %361 = vrot.lane.b32.xlu0 %v359_v37, %s1419_s17 }
 0x5c8   :  { %v362_v38 = vpop.permute.xlu0 %361 }
 0x5c9   :  { %365 = vst.msk [vmem:[#allocation4 + $0x10] sm:$0xff] %vm23_vm0, %v362_v38  ;;  %1125 = vmatmul.mubr.msk.f32.vlgmr.msra.gmra.mrb[2].mxu1 %vm23_vm0, %v362_v38 }
 0x5ca   :  { %1241 = vmatpush1.bf16.msra.mxu1 %v1472_v8  ;;  %647 = vmatprep.mubr.f32.mxu1 %v1418_v3 }
 0x5cb   :  { %1243 = vmatprep.subr.bf16.mxu1 %v1474_v9 }
 0x5ce   :  { %1245 = vmatpush1.bf16.msra.mxu1 %v1491_v14 }
 0x5cf   :  { %1247 = vmatprep.subr.bf16.mxu1 %v1495_v15 }
 0x5d2   :  { %1249 = vmatpush1.bf16.msra.mxu1 %v1511_v21 }
 0x5d3   :  { %1251 = vmatprep.subr.bf16.mxu1 %v1515_v22 }
 0x5d6   :  { %1253 = vmatpush1.bf16.msra.mxu1 %v1526_v25 }
 0x5d7   :  { %1271 = vmatprep.subr.bf16.mxu1 %v1461_v4 }
 0x69c   :  { %v437_v40 = vpop.f32.mrb[2].mxu1 }
 0x69d   :  { %v442_v41 = vadd.f32 %v1123_v39, %v437_v40  ;;  %v439_v42 = vpop.f32.mrb[3].mxu1 }
 0x69e   :  { %v443_v45 = vadd.f32 %v1124_v44, %v439_v42 }
 0x69f   :  { %v1126_v43 = vmul.f32 -1.442695, %v442_v41  ;;  %v1138_v41 = vld [vmem:[%s1688_s0 + $0x60] sm:$0xff] }
 0x6a0   :  { %v1127_v50 = vmul.f32 -1.442695, %v443_v45 }
 0x6a1   :  { %1326 = vpow2.f32 %v1126_v43 }
 0x6a2   :  { %1328 = vtanh.f32 %v443_v45 }
 0x6ab   :  { %v1327_v46 = vpop.eup %1326 }
 0x6ac   :  { %v447_v47 = vadd.f32 1.0, %v1327_v46  ;;  %v1329_v48 = vpop.eup %1328  ;;  %v1139_v46 = vld [vmem:[%s1688_s0 + $0x68] sm:$0xff] }
 0x6ae   :  { %1330 = vrcp.f32 %v447_v47 }
 0x6af   :  { %1332 = vpow2.f32 %v1127_v50 }
 0x6b8   :  { %v1331_v4 = vpop.eup %1330 }
 0x6b9   :  { %v458_v49 = vmul.f32 %v1331_v4, %v1329_v48  ;;  %v1333_v51 = vpop.eup %1332  ;;  %v457_v53 = vmul.f32 %v1331_v4, %v357_v34 }
 0x6ba   :  { %v454_v52 = vadd.f32 1.0, %v1333_v51 }
 0x6bb   :  { %460 = vrot.lane.b32.xlu1 %v458_v49, %s1419_s17 }
 0x6bc   :  { %1334 = vrcp.f32 %v454_v52 }
 0x6c6   :  { %v1335_v56 = vpop.eup %1334 }
 0x72d   :  { %v461_v54 = vpop.permute.xlu1 %460 }
 0x72e   :  { %v463_v55 = vadd.f32 %v461_v54, %v457_v53 }
 0x730   :  { %1336 = vtanh.f32 %v463_v55 }
 0x73a   :  { %v1337_v57 = vpop.eup %1336 }
 0x73b   :  { %v465_v58 = vmul.f32 %v1337_v57, %v1335_v56 }
 0x73d   :  { %467 = vrot.lane.b32.xlu0 %v465_v58, %s1419_s17 }
 0x7af   :  { %v468_v59 = vpop.permute.xlu0 %467 }
 0x7b0   :  { %471 = vst.msk [vmem:[#allocation4 + $0x18] sm:$0xff] %vm23_vm0, %v468_v59  ;;  %1130 = vmatmul.mubr.msk.f32.vlgmr.msra.gmra.mrb[4].mxu0 %vm23_vm0, %v468_v59 }
 0x7b1   :  { %1257 = vmatpush1.bf16.msra.mxu0 %v1472_v8  ;;  %753 = vmatprep.mubr.f32.mxu0 %v1418_v3 }
 0x7b2   :  { %1259 = vmatprep.subr.bf16.mxu0 %v1474_v9 }
 0x7b5   :  { %1261 = vmatpush1.bf16.msra.mxu0 %v1491_v14 }
 0x7b6   :  { %1263 = vmatprep.subr.bf16.mxu0 %v1495_v15 }
 0x7b9   :  { %1265 = vmatpush1.bf16.msra.mxu0 %v1511_v21 }
 0x7ba   :  { %1267 = vmatprep.subr.bf16.mxu0 %v1515_v22 }
 0x7bd   :  { %1269 = vmatpush1.bf16.msra.mxu0 %v1526_v25 }
 0x883   :  { %v543_v61 = vpop.f32.mrb[4].mxu0 }
 0x884   :  { %v548_v62 = vadd.f32 %v1128_v60, %v543_v61  ;;  %v545_v63 = vpop.f32.mrb[5].mxu0 }
 0x885   :  { %v549_v2 = vadd.f32 %v1129_v1, %v545_v63 }
 0x886   :  { %v1131_v0 = vmul.f32 -1.442695, %v548_v62  ;;  %v1143_v62 = vld [vmem:[%s1688_s0 + $0x70] sm:$0xff] }
 0x887   :  { %v1132_v12 = vmul.f32 -1.442695, %v549_v2 }
 0x888   :  { %1338 = vpow2.f32 %v1131_v0 }
 0x889   :  { %1340 = vtanh.f32 %v549_v2 }
 0x892   :  { %v1339_v5 = vpop.eup %1338 }
 0x893   :  { %v553_v6 = vadd.f32 1.0, %v1339_v5  ;;  %v1341_v7 = vpop.eup %1340  ;;  %v1144_v5 = vld [vmem:[%s1688_s0 + $0x78] sm:$0xff] }
 0x895   :  { %1342 = vrcp.f32 %v553_v6 }
 0x896   :  { %1344 = vpow2.f32 %v1132_v12 }
 0x89f   :  { %v1343_v10 = vpop.eup %1342 }
 0x8a0   :  { %v564_v11 = vmul.f32 %v1343_v10, %v1341_v7  ;;  %v1345_v13 = vpop.eup %1344  ;;  %v563_v17 = vmul.f32 %v1343_v10, %v463_v55 }
 0x8a1   :  { %v560_v16 = vadd.f32 1.0, %v1345_v13 }
 0x8a2   :  { %566 = vrot.lane.b32.xlu1 %v564_v11, %s1419_s17 }
 0x8a3   :  { %1346 = vrcp.f32 %v560_v16  ;;  %v902_v16 = vld [vmem:[#allocation4] sm:$0xff] }
 0x8ad   :  { %v1347_v20 = vpop.eup %1346 }
 0x914   :  { %v567_v18 = vpop.permute.xlu1 %566 }
 0x915   :  { %v569_v19 = vadd.f32 %v567_v18, %v563_v17  ;;  %v1148_v17 = vld [vmem:[%s1689_s2] ss:$0 sm:$0xff] }
 0x916   :  { %v917_v18 = vmul.f32 %v1148_v17, %v902_v16 }
 0x917   :  { %1348 = vtanh.f32 %v569_v19 }
 0x921   :  { %v1349_v23 = vpop.eup %1348 }
 0x922   :  { %v571_v24 = vmul.f32 %v1349_v23, %v1347_v20  ;;  %v925_v20 = vsel %vm23_vm0, %v917_v18, 0.0 }
 0x924   :  { %573 = vrot.lane.b32.xlu0 %v571_v24, %s1419_s17 }
 0x996   :  { %v574_v26 = vpop.permute.xlu0 %573 }
 0x997   :  { %577 = vst.msk [vmem:[#allocation4 + $0x20] sm:$0xff] %vm23_vm0, %v574_v26  ;;  %1135 = vmatmul.mubr.msk.f32.vlgmr.msra.gmra.mrb[4].mxu1 %vm23_vm0, %v574_v26 }
 0x998   :  { %1273 = vmatpush1.bf16.msra.mxu1 %v1472_v8  ;;  %859 = vmatprep.mubr.f32.mxu1 %v1418_v3 }
 0x999   :  { %1275 = vmatprep.subr.bf16.mxu1 %v1474_v9  ;;  %v1134_v9 = vld [vmem:[%s1688_s0 + $0x58] sm:$0xff] }
 0x99c   :  { %1277 = vmatpush1.bf16.msra.mxu1 %v1491_v14 }
 0x99d   :  { %1279 = vmatprep.subr.bf16.mxu1 %v1495_v15 }
 0x9a0   :  { %1281 = vmatpush1.bf16.msra.mxu1 %v1511_v21 }
 0x9a1   :  { %1283 = vmatprep.subr.bf16.mxu1 %v1515_v22 }
 0x9a4   :  { %1285 = vmatpush1.bf16.msra.mxu1 %v1526_v25 }
 0xa6a   :  { %v649_v28 = vpop.f32.mrb[4].mxu1 }
 0xa6b   :  { %v654_v8 = vadd.f32 %v1133_v27, %v649_v28  ;;  %v651_v29 = vpop.f32.mrb[5].mxu1 }
 0xa6c   :  { %v655_v14 = vadd.f32 %v1134_v9, %v651_v29  ;;  %v9_v29 = vstv %s1690_s3 }
 0xa6d   :  { %v1136_v3 = vmul.f32 -1.442695, %v654_v8  ;;  %v1420_v8 = vmov 0   ;;  %10 = vst [vmem:[#allocation5] sm:$0x1] %v9_v29 }
 0xa6e   :  { %v1137_v31 = vmul.f32 -1.442695, %v655_v14  ;;  %1289 = vset.pattern.permute.xlu0 %v1420_v8 }
 0xa6f   :  { %1350 = vpow2.f32 %v1136_v3 }
 0xa70   :  { %1352 = vtanh.f32 %v655_v14 }
 0xa79   :  { %v1351_v15 = vpop.eup %1350 }
 0xa7a   :  { %v659_v21 = vadd.f32 1.0, %v1351_v15  ;;  %v1353_v22 = vpop.eup %1352 }
 0xa7c   :  { %1354 = vrcp.f32 %v659_v21 }
 0xa7d   :  { %1356 = vpow2.f32 %v1137_v31 }
 0xa86   :  { %v1355_v25 = vpop.eup %1354 }
 0xa87   :  { %v670_v30 = vmul.f32 %v1355_v25, %v1353_v22  ;;  %v1357_v32 = vpop.eup %1356  ;;  %v669_v34 = vmul.f32 %v1355_v25, %v569_v19  ;;  %v905_v19 = vld [vmem:[#allocation4 + $0x18] sm:$0xff] }
 0xa88   :  { %v666_v33 = vadd.f32 1.0, %v1357_v32  ;;  %v920_v23 = vmul.f32 %v1148_v17, %v905_v19  ;;  %v903_v32 = vld [vmem:[#allocation4 + $0x8] sm:$0xff]  ;;  %v1023_v19 = vlaneseq }
 0xa89   :  { %672 = vrot.lane.b32.xlu1 %v670_v30, %s1419_s17 }
 0xa8a   :  { %1358 = vrcp.f32 %v666_v33  ;;  %v934_v26 = vsel %vm23_vm0, %v920_v23, 0.0  ;;  %v918_v33 = vmul.f32 %v1148_v17, %v903_v32  ;;  %v1026_v8 = vshrl.u32 %v1023_v19, 7 }
 0xa94   :  { %v1359_v37 = vpop.eup %1358 }
 0xafb   :  { %v673_v35 = vpop.permute.xlu1 %672 }
 0xafc   :  { %v675_v36 = vadd.f32 %v673_v35, %v669_v34  ;;  %v904_v34 = vld [vmem:[#allocation4 + $0x10] sm:$0xff]  ;;  %v928_v35 = vsel %vm23_vm0, %v918_v33, 0.0 }
 0xafe   :  { %1360 = vtanh.f32 %v675_v36 }
 0xb08   :  { %v1361_v38 = vpop.eup %1360 }
 0xb09   :  { %v677_v39 = vmul.f32 %v1361_v38, %v1359_v37  ;;  %v906_v37 = vld [vmem:[#allocation4 + $0x20] sm:$0xff] }
 0xb0b   :  { %679 = vrot.lane.b32.xlu0 %v677_v39, %s1419_s17  ;;  %v921_v39 = vmul.f32 %v1148_v17, %v906_v37 }
 0xb7d   :  { %v680_v40 = vpop.permute.xlu0 %679 }
 0xb7e   :  { %683 = vst.msk [vmem:[#allocation4 + $0x28] sm:$0xff] %vm23_vm0, %v680_v40  ;;  %1140 = vmatmul.mubr.msk.f32.vlgmr.msra.gmra.mrb[6].mxu0 %vm23_vm0, %v680_v40 }
 0xb85   :  { %v907_v24 = vld [vmem:[#allocation4 + $0x28] sm:$0xff] }
 0xb86   :  { %v922_v27 = vmul.f32 %v1148_v17, %v907_v24 }
 0xb88   :  { %v940_v28 = vsel %vm23_vm0, %v922_v27, 0.0 }
 0xc51   :  { %v755_v42 = vpop.f32.mrb[6].mxu0 }
 0xc52   :  { %v760_v43 = vadd.f32 %v1138_v41, %v755_v42  ;;  %v757_v44 = vpop.f32.mrb[7].mxu0  ;;  %v937_v41 = vsel %vm23_vm0, %v921_v39, 0.0 }
 0xc53   :  { %v761_v47 = vadd.f32 %v1139_v46, %v757_v44  ;;  %v1149_v44 = vld [vmem:[#allocation5] ss:$0 sm:$0xff] }
 0xc54   :  { %v1141_v45 = vmul.f32 -1.442695, %v760_v43 }
 0xc55   :  { %v1142_v52 = vmul.f32 -1.442695, %v761_v47 }
 0xc56   :  { %1362 = vpow2.f32 %v1141_v45 }
 0xc57   :  { %1364 = vtanh.f32 %v761_v47 }
 0xc60   :  { %v1363_v48 = vpop.eup %1362 }
 0xc61   :  { %v765_v4 = vadd.f32 1.0, %v1363_v48  ;;  %v1365_v49 = vpop.eup %1364 }
 0xc63   :  { %1366 = vrcp.f32 %v765_v4 }
 0xc64   :  { %1368 = vpow2.f32 %v1142_v52 }
 0xc6d   :  { %v1367_v50 = vpop.eup %1366 }
 0xc6e   :  { %v776_v51 = vmul.f32 %v1367_v50, %v1365_v49  ;;  %v1369_v53 = vpop.eup %1368  ;;  %v775_v55 = vmul.f32 %v1367_v50, %v675_v36  ;;  %v919_v36 = vmul.f32 %v1148_v17, %v904_v34 }
 0xc6f   :  { %v772_v54 = vadd.f32 1.0, %v1369_v53 }
 0xc70   :  { %778 = vrot.lane.b32.xlu1 %v776_v51, %s1419_s17  ;;  %v931_v38 = vsel %vm23_vm0, %v919_v36, 0.0 }
 0xc71   :  { %1370 = vrcp.f32 %v772_v54 }
 0xc7b   :  { %v1371_v58 = vpop.eup %1370 }
 0xce2   :  { %v779_v56 = vpop.permute.xlu1 %778 }
 0xce3   :  { %v781_v57 = vadd.f32 %v779_v56, %v775_v55 }
 0xce5   :  { %1372 = vtanh.f32 %v781_v57 }
 0xcef   :  { %v1373_v59 = vpop.eup %1372 }
 0xcf0   :  { %v783_v60 = vmul.f32 %v1373_v59, %v1371_v58 }
 0xcf2   :  { %785 = vrot.lane.b32.xlu0 %v783_v60, %s1419_s17 }
 0xd64   :  { %v786_v61 = vpop.permute.xlu0 %785 }
 0xd65   :  { %789 = vst.msk [vmem:[#allocation4 + $0x30] sm:$0xff] %vm23_vm0, %v786_v61  ;;  %1145 = vmatmul.mubr.msk.f32.vlgmr.msra.gmra.mrb[6].mxu1 %vm23_vm0, %v786_v61 }
 0xd6c   :  { %v908_v40 = vld [vmem:[#allocation4 + $0x30] sm:$0xff] }
 0xd6d   :  { %v923_v42 = vmul.f32 %v1148_v17, %v908_v40 }
 0xd6f   :  { %v943_v43 = vsel %vm23_vm0, %v923_v42, 0.0 }
 0xe38   :  { %v861_v63 = vpop.f32.mrb[6].mxu1 }
 0xe39   :  { %v866_v0 = vadd.f32 %v1143_v62, %v861_v63  ;;  %v863_v1 = vpop.f32.mrb[7].mxu1 }
 0xe3a   :  { %v867_v6 = vadd.f32 %v1144_v5, %v863_v1 }
 0xe3b   :  { %v1146_v2 = vmul.f32 -1.442695, %v866_v0 }
 0xe3c   :  { %v1147_v3 = vmul.f32 -1.442695, %v867_v6 }
 0xe3d   :  { %1374 = vpow2.f32 %v1146_v2 }
 0xe3e   :  { %1376 = vtanh.f32 %v867_v6 }
 0xe47   :  { %v1375_v7 = vpop.eup %1374 }
 0xe48   :  { %v871_v10 = vadd.f32 1.0, %v1375_v7  ;;  %v1377_v11 = vpop.eup %1376 }
 0xe4a   :  { %1378 = vrcp.f32 %v871_v10 }
 0xe4b   :  { %1380 = vpow2.f32 %v1147_v3 }
 0xe54   :  { %v1379_v12 = vpop.eup %1378 }
 0xe55   :  { %v882_v13 = vmul.f32 %v1379_v12, %v1377_v11  ;;  %v1381_v9 = vpop.eup %1380  ;;  %v881_v15 = vmul.f32 %v1379_v12, %v781_v57 }
 0xe56   :  { %v878_v14 = vadd.f32 1.0, %v1381_v9 }
 0xe57   :  { %884 = vrot.lane.b32.xlu1 %v882_v13, %s1419_s17 }
 0xe58   :  { %1382 = vrcp.f32 %v878_v14 }
 0xe62   :  { %v1383_v25 = vpop.eup %1382 }
 0xe7b   :  { %926 = vadd.xlane.f32.xlu1 %v925_v20 }
 0xe7f   :  { %935 = vadd.xlane.f32.xlu1 %v934_v26 }
 0xe83   :  { %941 = vadd.xlane.f32.xlu1 %v940_v28  ;;  %v1024_v28 = vand.u32 127, %v1023_v19 }
 0xec9   :  { %v885_v21 = vpop.permute.xlu1 %884 }
 0xeca   :  { %v887_v22 = vadd.f32 %v885_v21, %v881_v15  ;;  %v1027_v21 = vsub.s32 %v1024_v28, %v1026_v8 }
 0xecc   :  { %1384 = vtanh.f32 %v887_v22 }
 0xed6   :  { %v1385_v30 = vpop.eup %1384 }
 0xed7   :  { %v889_v31 = vmul.f32 %v1385_v30, %v1383_v25 }
 0xed9   :  { %891 = vrot.lane.b32.xlu0 %v889_v31, %s1419_s17 }
 0xef8   :  { %929 = vadd.xlane.f32.xlu0 %v928_v35 }
 0xefc   :  { %932 = vadd.xlane.f32.xlu0 %v931_v38 }
 0xf00   :  { %938 = vadd.xlane.f32.xlu0 %v937_v41 }
 0xf04   :  { %944 = vadd.xlane.f32.xlu0 %v943_v43 }
 0xf08   :  { %v927_v53 = vpop.xlane.xlu1 %926 }
 0xf0c   :  { %v936_v59 = vpop.xlane.xlu1 %935 }
 0xf10   :  { %v942_v0 = vpop.xlane.xlu1 %941 }
 0xf1a   :  { %956 = vperm.xlu0 %1289, %v1149_v44  }
 0xf4b   :  { %v892_v45 = vpop.permute.xlu0 %891 }
 0xf4c   :  { %895 = vst.msk [vmem:[#allocation4 + $0x38] sm:$0xff] %vm23_vm0, %v892_v45  ;;  %896 = vst.msk [vmem:[#allocation2] sm:$0xff] %vm23_vm0, %v892_v45 }
 0xf53   :  { %v909_v46 = vld [vmem:[#allocation4 + $0x38] sm:$0xff] }
 0xf54   :  { %v924_v47 = vmul.f32 %v1148_v17, %v909_v46 }
 0xf56   :  { %v946_v48 = vsel %vm23_vm0, %v924_v47, 0.0 }
 0xf57   :  { %947 = vadd.xlane.f32.xlu1 %v946_v48 }
 0xf68   :  { %898 = vrot.lane.b32.xlu1 %v887_v22, %s1419_s17 }
 0xf85   :  { %v930_v4 = vpop.xlane.xlu0 %929 }
 0xf89   :  { %v933_v49 = vpop.xlane.xlu0 %932 }
 0xf8d   :  { %v939_v50 = vpop.xlane.xlu0 %938 }
 0xf91   :  { %v945_v51 = vpop.xlane.xlu0 %944 }
 0xf99   :  { %v957_v52 = vpop.permute.xlu0 %956 }
 0xf9a   :  { %v959_v54 = vadd.f32 %v957_v52, %v927_v53  ;;  %v960_v55 = vadd.f32 %v957_v52, %v930_v4  ;;  %v961_v56 = vadd.f32 %v957_v52, %v933_v49  ;;  %v962_v61 = vadd.f32 %v957_v52, %v936_v59 }
 0xf9b   :  { %v963_v62 = vadd.f32 %v957_v52, %v939_v50  ;;  %v964_v1 = vadd.f32 %v957_v52, %v942_v0  ;;  %v965_v2 = vadd.f32 %v957_v52, %v945_v51 }
 0xf9c   :  { %v1150_v57 = vmul.f32 -1.442695, %v959_v54  ;;  %v1151_v58 = vmul.f32 -1.442695, %v960_v55  ;;  %v1152_v60 = vmul.f32 -1.442695, %v961_v56 }
 0xf9d   :  { %v1153_v63 = vmul.f32 -1.442695, %v962_v61  ;;  %v1154_v5 = vmul.f32 -1.442695, %v963_v62  ;;  %v1155_v10 = vmul.f32 -1.442695, %v964_v1 }
 0xf9e   :  { %1386 = vpow2.f32 %v1150_v57  ;;  %v1156_v11 = vmul.f32 -1.442695, %v965_v2 }
 0xf9f   :  { %1388 = vpow2.f32 %v1151_v58 }
 0xfa0   :  { %1390 = vpow2.f32 %v1152_v60 }
 0xfa1   :  { %1392 = vpow2.f32 %v1153_v63 }
 0xfa2   :  { %1394 = vpow2.f32 %v1154_v5 }
 0xfa3   :  { %1396 = vpow2.f32 %v1155_v10 }
 0xfa4   :  { %1398 = vpow2.f32 %v1156_v11 }
 0xfa8   :  { %v1387_v6 = vpop.eup %1386 }
 0xfa9   :  { %v1389_v7 = vpop.eup %1388  ;;  %v991_v12 = vadd.f32 1.0, %v1387_v6 }
 0xfaa   :  { %v1391_v13 = vpop.eup %1390  ;;  %v992_v16 = vadd.f32 1.0, %v1389_v7 }
 0xfab   :  { %v993_v17 = vadd.f32 1.0, %v1391_v13  ;;  %1400 = vrcp.f32 %v991_v12  ;;  %v1393_v18 = vpop.eup %1392 }
 0xfac   :  { %1402 = vrcp.f32 %v992_v16  ;;  %v1395_v24 = vpop.eup %1394  ;;  %v994_v26 = vadd.f32 1.0, %v1393_v18 }
 0xfad   :  { %1404 = vrcp.f32 %v993_v17  ;;  %v1397_v3 = vpop.eup %1396  ;;  %v995_v9 = vadd.f32 1.0, %v1395_v24 }
 0xfae   :  { %v1399_v14 = vpop.eup %1398  ;;  %v996_v25 = vadd.f32 1.0, %v1397_v3 }
 0xfaf   :  { %v997_v31 = vadd.f32 1.0, %v1399_v14 }
 0xfb5   :  { %v1401_v15 = vpop.eup %1400 }
 0xfb6   :  { %v1403_v22 = vpop.eup %1402  ;;  %v1028_v32 = vrot.slane %v1401_v15, %v1027_v21 }
 0xfb7   :  { %v1405_v30 = vpop.eup %1404  ;;  %v1032_v33 = vrot.slane %v1403_v22, %v1027_v21 }
 0xfb8   :  { %v1036_v34 = vrot.slane %v1405_v30, %v1027_v21 }
 0xfb9   :  { %v1058_v36 = vsel %vm1057_vm1, %v1032_v33, %v1028_v32 }
 0xfba   :  { %v1060_v39 = vsel %vm1059_vm2, %v1036_v34, %v1058_v36 }
 0xfe4   :  { %v948_v20 = vpop.xlane.xlu1 %947 }
 0xfe5   :  { %v966_v23 = vadd.f32 %v957_v52, %v948_v20 }
 0xfe7   :  { %v1157_v27 = vmul.f32 -1.442695, %v966_v23 }
 0xfe8   :  { %v899_v29 = vpop.permute.xlu1 %898 }
 0xfe9   :  { %1406 = vpow2.f32 %v1157_v27  ;;  %901 = vst.msk [vmem:[#allocation3] sm:$0xff] %vm23_vm0, %v899_v29 }
 0xfea   :  { %1408 = vrcp.f32 %v994_v26 }
 0xfeb   :  { %1410 = vrcp.f32 %v995_v9 }
 0xfec   :  { %1412 = vrcp.f32 %v996_v25 }
 0xfed   :  { %1414 = vrcp.f32 %v997_v31 }
 0xff3   :  { %v1407_v35 = vpop.eup %1406 }
 0xff4   :  { %v1409_v37 = vpop.eup %1408  ;;  %v998_v38 = vadd.f32 1.0, %v1407_v35 }
 0xff5   :  { %v1411_v40 = vpop.eup %1410  ;;  %v1040_v41 = vrot.slane %v1409_v37, %v1027_v21 }
 0xff6   :  { %1416 = vrcp.f32 %v998_v38  ;;  %v1413_v43 = vpop.eup %1412  ;;  %v1044_v44 = vrot.slane %v1411_v40, %v1027_v21 }
 0xff7   :  { %v1062_v42 = vsel %vm1061_vm3, %v1040_v41, %v1060_v39  ;;  %v1415_v46 = vpop.eup %1414  ;;  %v1048_v47 = vrot.slane %v1413_v43, %v1027_v21 }
 0xff8   :  { %v1064_v45 = vsel %vm1063_vm4, %v1044_v44, %v1062_v42  ;;  %v1052_v49 = vrot.slane %v1415_v46, %v1027_v21 }
 0xff9   :  { %v1066_v48 = vsel %vm1065_vm5, %v1048_v47, %v1064_v45 }
 0xffa   :  { %v1068_v51 = vsel %vm1067_vm6, %v1052_v49, %v1066_v48 }
0x1000   :  { %v1417_v4 = vpop.eup %1416 }
0x1001   :  { %v1056_v50 = vrot.slane %v1417_v4, %v1027_v21 }
0x1003   :  { %v1070_v52 = vsel %vm1069_vm7, %v1056_v50, %v1068_v51 }
0x1004   :  { %1072 = vxpose.xlu1.b32.start.end [1/1] (short) (narrow) %v1070_v52, 8 }
0x1084   :  { %v1088_v53 = vpop.trf.xlu1 }
0x1085   :  { %1105 = vst.msk [vmem:[%s1691_s4] sm:$0xff] %vm1104_vm8, %v1088_v53 }

</bundles_post_ra>
